<compile_context>
chip_gen: v5e
topology: v5e:2x2
jax: 0.10.0
libtpu: 0.0.40
codegen_flags: <defaults>
</compile_context>

<pallas_src>
import functools
import math

import jax
import jax.numpy as jnp
from jax.experimental import pallas as pl
from jax.experimental.pallas import tpu as pltpu

LN_EPS = 1e-4  # glow-tts attentions.LayerNorm default eps


def _round_up(v, m):
    return ((v + m - 1) // m) * m


# ----------------------------- Pallas kernel --------------------------------

def duration_predictor_kernel(cin, kernel_size, mm_dtype,
                              x_ref, w1_ref, w2_ref, vecs_ref, bp_ref,
                              o_ref):
    """One (batch, T-tile) grid step.

    x_ref : (1, 1, cin+1, tile_t + 4*pad) halo'd window; row `cin` is the mask.
    w1_ref: (k, cin, fc)  conv_1 weights, tap-major, mm_dtype.
    w2_ref: (k, fc, fc)   conv_2 weights, tap-major, mm_dtype.
    vecs  : (fc, 7)  f32  packed [b1 g1 be1 b2 g2 be2 wp] per-channel vectors.
    bp_ref: (1,) SMEM f32 projection bias scalar.
    o_ref : (1, 1, tile_t) lane-dense output tile.
    """
    pad = kernel_size // 2
    tile_t = o_ref.shape[-1]
    w1_width = tile_t + 2 * pad            # conv_1 output width (conv_2's halo)

    xa = x_ref[0, 0]                       # (cin+1, tile_t + 4*pad), native dtype
    x_in = xa[:cin, :]
    mask0 = xa[cin:cin + 1, :]             # (1, tile_t + 4*pad)
    mask0_f = mask0.astype(jnp.float32)

    # Packed per-channel vectors: one VMEM block instead of eight padded ones.
    b1 = vecs_ref[:, 0:1]
    g1 = vecs_ref[:, 1:2]
    be1 = vecs_ref[:, 2:3]
    b2 = vecs_ref[:, 3:4]
    g2 = vecs_ref[:, 4:5]
    be2 = vecs_ref[:, 5:6]
    wp = vecs_ref[:, 6:7]

    def conv_valid(inp, w_ref, width_out):
        """'valid' conv on a halo'd buffer: k lane-shifted slices feeding k
        accumulating matmuls (f32 accumulation); no im2col materialization."""
        acc = None
        for d in range(kernel_size):                      # static unroll over taps
            tap = inp[:, d:d + width_out]                 # (C, width_out), mm_dtype
            y = jax.lax.dot_general(
                w_ref[d], tap,
                dimension_numbers=(((0,), (0,)), ((), ())),
                preferred_element_type=jnp.float32)       # (fc, width_out) f32
            acc = y if acc is None else acc + y
        return acc

    def layer_norm(h, g, be):
        """glow-tts LayerNorm: normalize over the channel (sublane) axis."""
        mean = jnp.mean(h, axis=0, keepdims=True)
        var = jnp.mean(jnp.square(h - mean), axis=0, keepdims=True)
        return (h - mean) * jax.lax.rsqrt(var + LN_EPS) * g + be

    # conv_1(x * mask) -> relu -> norm_1   (dropout = identity at inference).
    # Cast to the matmul dtype once, BEFORE slicing the taps.
    xm = (x_in * mask0).astype(mm_dtype)
    h = conv_valid(xm, w1_ref, w1_width) + b1             # (fc, tile_t+2*pad) f32
    h = jnp.maximum(h, 0.0)
    h = layer_norm(h, g1, be1)

    # conv_2(h * mask) -> relu -> norm_2
    mask1_f = mask0_f[:, pad:pad + w1_width]
    hm = (h * mask1_f).astype(mm_dtype)
    h = conv_valid(hm, w2_ref, tile_t) + b2               # (fc, tile_t) f32
    h = jnp.maximum(h, 0.0)
    h = layer_norm(h, g2, be2)

    # 1x1 projection: VPU multiply + channel reduction (avoids an N=1 MXU pass).
    # proj(h*m)*m == (W.h + b)*m for a binary {0,1} mask, so the inner mask
    # multiply is dropped.
    mask2_f = mask0_f[:, 2 * pad:2 * pad + tile_t]        # (1, tile_t)
    y = jnp.sum(h * wp, axis=0, keepdims=True) + bp_ref[0]
    o_ref[0] = (y * mask2_f).astype(o_ref.dtype)          # lane-dense store


# ------------------------------ JAX wrapper ----------------------------------

def duration_predictor(x_nct, x_mask_n1t, params, kernel_size,
                       mm_dtype=jnp.bfloat16, tile_t=512):
    """x: (B, C_in, T), x_mask: (B, 1, T) -> (B, 1, T)."""
    B, cin, T = x_nct.shape
    k = kernel_size
    pad = k // 2
    fc = params["w1"].shape[-1]
    in_dtype = x_nct.dtype

    # Lane-dense T tiling (multiples of 128). tile_t bounds the per-step
    # working set: at fc<=256 the default 512 uses < ~4 MiB, well under the
    # scoped VMEM budget on every generation (v5e 16 MiB default, v7x 32 MiB
    # scoped / 64 MiB physical).
    tile_t = max(128, (min(tile_t, _round_up(T, 128)) // 128) * 128)
    t_pad = _round_up(T, tile_t)
    nt = t_pad // tile_t
    w0 = tile_t + 4 * pad                      # halo'd input window width

    # Append the mask as one extra channel row (binary -> exact in any float
    # dtype) so one block fetch brings both; keep x in its NATIVE dtype (no
    # wrapper-side f32 upcast). Zero-pad T to t_pad plus a 2*pad halo per side
    # (zeros under a zero mask == PyTorch's conv zero padding), then unfold the
    # NT overlapping halo'd windows (~4*pad/tile_t duplication) so plain
    # BlockSpec indexing + auto-pipelining covers the overlapping reads.
    xa = jnp.concatenate([x_nct, x_mask_n1t.astype(in_dtype)], axis=1)
    xa = jnp.pad(xa, ((0, 0), (0, 0), (2 * pad, t_pad - T + 2 * pad)))
    xw = jnp.stack([xa[:, :, i * tile_t:i * tile_t + w0] for i in range(nt)],
                   axis=1)                     # (B, NT, cin+1, w0)

    # Conv weights tap-major (k, Cin, Cout); matmul operands in mm_dtype.
    w1 = params["w1"].astype(mm_dtype)         # (k, cin, fc)
    w2 = params["w2"].astype(mm_dtype)         # (k, fc, fc)
    # Pack the seven per-channel vectors into a single (fc, 7) block.
    vecs = jnp.concatenate(
        [params["b1"].reshape(fc, 1), params["g1"].reshape(fc, 1),
         params["be1"].reshape(fc, 1), params["b2"].reshape(fc, 1),
         params["g2"].reshape(fc, 1), params["be2"].reshape(fc, 1),
         params["wp"].reshape(fc, 1)], axis=1).astype(jnp.float32)
    bp = params["bp"].reshape(1).astype(jnp.float32)     # scalar bias -> SMEM

    kern = functools.partial(duration_predictor_kernel, cin, k, mm_dtype)

    flops = 2 * B * t_pad * k * fc * (cin + fc) + 10 * B * t_pad * fc
    bytes_accessed = (xw.size * xw.dtype.itemsize + B * t_pad * 4 +
                      w1.size * w1.dtype.itemsize +
                      w2.size * w2.dtype.itemsize + vecs.size * 4)

    out = pl.pallas_call(
        kern,
        out_shape=jax.ShapeDtypeStruct((B, 1, t_pad), jnp.float32),
        grid_spec=pltpu.PrefetchScalarGridSpec(
            num_scalar_prefetch=0,
            grid=(B, nt),
            in_specs=[
                # Halo'd (x, mask) window for this (batch, T-tile).
                # TODO(synk): if v5e profiling shows exposed input DMA, set
                # pipeline_mode=pl.Buffered(3) on this spec.
                pl.BlockSpec((1, 1, cin + 1, w0), lambda b, t: (b, t, 0, 0)),
                # Weights / packed vectors: constant index -> stay resident.
                pl.BlockSpec((k, cin, fc), lambda b, t: (0, 0, 0)),
                pl.BlockSpec((k, fc, fc), lambda b, t: (0, 0, 0)),
                pl.BlockSpec((fc, 7), lambda b, t: (0, 0)),
                pl.BlockSpec(memory_space=pltpu.MemorySpace.SMEM),   # bp scalar
            ],
            out_specs=pl.BlockSpec((1, 1, tile_t), lambda b, t: (b, 0, t)),
        ),
        compiler_params=pltpu.CompilerParams(
            # Both axes independent -> B*NT parallel units (v7x 2 TCs get work
            # even for B=1).
            dimension_semantics=("parallel", "parallel"),
            vmem_limit_bytes=32 * 1024 * 1024),
        cost_estimate=pl.CostEstimate(
            flops=int(flops), transcendentals=int(2 * B * t_pad),
            bytes_accessed=int(bytes_accessed)),
    )(xw, w1, w2, vecs, bp)

    return out[:, :, :T]


# --------------------------- params & reference -----------------------------

def init_params(key, in_channels, filter_channels, kernel_size):
    ks = jax.random.split(key, 6)

    def conv_w(k, c_in, c_out, ksz):
        bound = 1.0 / math.sqrt(c_in * ksz)
        # stored as (k, in, out); torch Conv1d is (out, in, k)
        return jax.random.uniform(k, (ksz, c_in, c_out), jnp.float32, -bound, bound)

    def conv_b(k, c_in, c_out, ksz):
        bound = 1.0 / math.sqrt(c_in * ksz)
        return jax.random.uniform(k, (1, c_out), jnp.float32, -bound, bound)

    return dict(
        w1=conv_w(ks[0], in_channels, filter_channels, kernel_size),
        b1=conv_b(ks[1], in_channels, filter_channels, kernel_size),
        g1=jnp.ones((1, filter_channels), jnp.float32),
        be1=jnp.zeros((1, filter_channels), jnp.float32),
        w2=conv_w(ks[2], filter_channels, filter_channels, kernel_size),
        b2=conv_b(ks[3], filter_channels, filter_channels, kernel_size),
        g2=jnp.ones((1, filter_channels), jnp.float32),
        be2=jnp.zeros((1, filter_channels), jnp.float32),
        wp=conv_w(ks[4], filter_channels, 1, 1).reshape(filter_channels, 1),
        bp=conv_b(ks[5], filter_channels, 1, 1).reshape(1, 1),
    )


def ref_forward(x, x_mask, p, kernel_size):
    """Pure-JAX reference in PyTorch NCL layout."""
    pad = kernel_size // 2

    def conv(inp, w, b, pd):
        wt = jnp.transpose(w, (2, 1, 0))  # (out, in, k)
        y = jax.lax.conv_general_dilated(
            inp, wt, window_strides=(1,), padding=[(pd, pd)],
            dimension_numbers=("NCH", "OIH", "NCH"))
        return y + b[0][None, :, None]

    def ln(h, g, b):
        mean = jnp.mean(h, axis=1, keepdims=True)
        var = jnp.mean((h - mean) ** 2, axis=1, keepdims=True)
        hn = (h - mean) * jax.lax.rsqrt(var + LN_EPS)
        return hn * g[0][None, :, None] + b[0][None, :, None]

    h = conv(x * x_mask, p["w1"], p["b1"], pad)
    h = jax.nn.relu(h)
    h = ln(h, p["g1"], p["be1"])
    h = conv(h * x_mask, p["w2"], p["b2"], pad)
    h = jax.nn.relu(h)
    h = ln(h, p["g2"], p["be2"])
    wp3 = p["wp"].T[:, :, None]          # (1, F, 1)
    h = conv(h * x_mask, jnp.transpose(wp3, (2, 1, 0)), p["bp"], 0)
    return h * x_mask


# ---------------------------------- main -------------------------------------

if __name__ == "__main__":
    key = jax.random.PRNGKey(0)
    k1, k2 = jax.random.split(key)

    def make_case(case_key, B, cin, fc, ksz, T, lengths):
        kp, kx = jax.random.split(case_key)
        params = init_params(kp, cin, fc, ksz)
        x = jax.random.normal(kx, (B, cin, T), jnp.float32)
        lens = jnp.asarray(lengths)
        mask = (jnp.arange(T)[None, :] < lens[:, None]).astype(jnp.float32)[:, None, :]
        return params, x, mask

    # Case 1: single T tile (T=16 -> one lane-padded 128 tile), k=3.
    B, C_IN, FILTER, K, T = 2, 16, 32, 3, 16
    params, x, x_mask = make_case(k1, B, C_IN, FILTER, K, T, [T, 11])
    ref = ref_forward(x, x_mask, params, K)

    out_f32 = jax.block_until_ready(
        duration_predictor(x, x_mask, params, K, mm_dtype=jnp.float32))
    assert out_f32.shape == (B, 1, T), out_f32.shape
    assert jnp.allclose(out_f32, ref, atol=2e-4, rtol=2e-4), \
        float(jnp.max(jnp.abs(out_f32 - ref)))

    out_bf16 = jax.block_until_ready(
        duration_predictor(x, x_mask, params, K, mm_dtype=jnp.bfloat16))
    assert out_bf16.shape == (B, 1, T), out_bf16.shape
    assert jnp.allclose(out_bf16, ref, atol=5e-2, rtol=5e-2), \
        float(jnp.max(jnp.abs(out_bf16 - ref)))

    # Case 2: multiple T tiles (T=300, tile_t=128 -> 3 tiles) with k=5 halos
    # crossing tile boundaries; ragged lengths exercise the mask path.
    B, C_IN, FILTER, K, T = 2, 16, 32, 5, 300
    params, x, x_mask = make_case(k2, B, C_IN, FILTER, K, T, [300, 201])
    ref = ref_forward(x, x_mask, params, K)

    out_tiled = jax.block_until_ready(
        duration_predictor(x, x_mask, params, K, mm_dtype=jnp.float32, tile_t=128))
    assert out_tiled.shape == (B, 1, T), out_tiled.shape
    assert jnp.allclose(out_tiled, ref, atol=2e-4, rtol=2e-4), \
        float(jnp.max(jnp.abs(out_tiled - ref)))

    print("KERNEL_OK")
</pallas_src>

<mosaic_0001>
module attributes {stable_mosaic.version = 11 : i64} {
  func.func @duration_predictor_kernel(%arg0: i32, %arg1: i32, %arg2: memref<1x1x17x132xf32, #tpu.memory_space<vmem>>, %arg3: memref<3x16x32xf32, #tpu.memory_space<vmem>>, %arg4: memref<3x32x32xf32, #tpu.memory_space<vmem>>, %arg5: memref<32x7xf32, #tpu.memory_space<vmem>>, %arg6: memref<1xf32, #tpu.memory_space<smem>>, %arg7: memref<1x1x128xf32, #tpu.memory_space<vmem>>) attributes {dimension_semantics = [#tpu.dimension_semantics<parallel>, #tpu.dimension_semantics<parallel>], iteration_bounds = array<i64: 2, 1>, scalar_prefetch = 0 : i64, scratch_operands = 0 : i64, tpu.core_type = #tpu.core_type<tc>, window_params = [{transform_indices = @transform_0, window_bounds = array<i64: 1, 1, 17, 132>}, {pipeline_mode = #tpu.pipeline_mode<synchronous>, transform_indices = @transform_1, window_bounds = array<i64: 3, 16, 32>}, {pipeline_mode = #tpu.pipeline_mode<synchronous>, transform_indices = @transform_2, window_bounds = array<i64: 3, 32, 32>}, {pipeline_mode = #tpu.pipeline_mode<synchronous>, transform_indices = @transform_3, window_bounds = array<i64: 32, 7>}, {transform_indices = @transform_4, window_bounds = array<i64: 1>}, {transform_indices = @transform_5, window_bounds = array<i64: 1, 1, 128>}]} {
    %c0 = arith.constant 0 : index
    %c0_0 = arith.constant 0 : index
    %c0_1 = arith.constant 0 : index
    %c0_2 = arith.constant 0 : index
    %0 = vector.load %arg2[%c0, %c0_0, %c0_1, %c0_2] : memref<1x1x17x132xf32, #tpu.memory_space<vmem>>, vector<1x1x17x132xf32>
    %1 = vector.shape_cast %0 : vector<1x1x17x132xf32> to vector<17x132xf32>
    %2 = vector.extract_strided_slice %1 {offsets = [0, 0], sizes = [16, 132], strides = [1, 1]} : vector<17x132xf32> to vector<16x132xf32>
    %3 = vector.extract_strided_slice %1 {offsets = [16, 0], sizes = [1, 132], strides = [1, 1]} : vector<17x132xf32> to vector<1x132xf32>
    %c0_3 = arith.constant 0 : index
    %c0_4 = arith.constant 0 : index
    %4 = vector.load %arg5[%c0_3, %c0_4] : memref<32x7xf32, #tpu.memory_space<vmem>>, vector<32x1xf32>
    %c0_5 = arith.constant 0 : index
    %c1 = arith.constant 1 : index
    %5 = vector.load %arg5[%c0_5, %c1] : memref<32x7xf32, #tpu.memory_space<vmem>>, vector<32x1xf32>
    %c0_6 = arith.constant 0 : index
    %c2 = arith.constant 2 : index
    %6 = vector.load %arg5[%c0_6, %c2] : memref<32x7xf32, #tpu.memory_space<vmem>>, vector<32x1xf32>
    %c0_7 = arith.constant 0 : index
    %c3 = arith.constant 3 : index
    %7 = vector.load %arg5[%c0_7, %c3] : memref<32x7xf32, #tpu.memory_space<vmem>>, vector<32x1xf32>
    %c0_8 = arith.constant 0 : index
    %c4 = arith.constant 4 : index
    %8 = vector.load %arg5[%c0_8, %c4] : memref<32x7xf32, #tpu.memory_space<vmem>>, vector<32x1xf32>
    %c0_9 = arith.constant 0 : index
    %c5 = arith.constant 5 : index
    %9 = vector.load %arg5[%c0_9, %c5] : memref<32x7xf32, #tpu.memory_space<vmem>>, vector<32x1xf32>
    %c0_10 = arith.constant 0 : index
    %c6 = arith.constant 6 : index
    %10 = vector.load %arg5[%c0_10, %c6] : memref<32x7xf32, #tpu.memory_space<vmem>>, vector<32x1xf32>
    %11 = vector.broadcast %3 : vector<1x132xf32> to vector<16x132xf32>
    %12 = arith.mulf %2, %11 : vector<16x132xf32>
    %13 = vector.extract_strided_slice %12 {offsets = [0, 0], sizes = [16, 130], strides = [1, 1]} : vector<16x132xf32> to vector<16x130xf32>
    %c0_11 = arith.constant 0 : index
    %c0_12 = arith.constant 0 : index
    %c0_13 = arith.constant 0 : index
    %14 = vector.load %arg3[%c0_11, %c0_12, %c0_13] : memref<3x16x32xf32, #tpu.memory_space<vmem>>, vector<1x16x32xf32>
    %15 = vector.shape_cast %14 : vector<1x16x32xf32> to vector<16x32xf32>
    %cst = arith.constant dense<0.000000e+00> : vector<32x130xf32>
    %16 = tpu.matmul %15, %13, %cst {dimension_numbers = #tpu.dot_dimension_numbers<[0], [0], [1], [1], [0, 1, 1, 1], [], []>} : vector<16x32xf32>, vector<16x130xf32>, vector<32x130xf32> -> vector<32x130xf32>
    %17 = vector.extract_strided_slice %12 {offsets = [0, 1], sizes = [16, 130], strides = [1, 1]} : vector<16x132xf32> to vector<16x130xf32>
    %c1_14 = arith.constant 1 : index
    %c0_15 = arith.constant 0 : index
    %c0_16 = arith.constant 0 : index
    %18 = vector.load %arg3[%c1_14, %c0_15, %c0_16] : memref<3x16x32xf32, #tpu.memory_space<vmem>>, vector<1x16x32xf32>
    %19 = vector.shape_cast %18 : vector<1x16x32xf32> to vector<16x32xf32>
    %cst_17 = arith.constant dense<0.000000e+00> : vector<32x130xf32>
    %20 = tpu.matmul %19, %17, %cst_17 {dimension_numbers = #tpu.dot_dimension_numbers<[0], [0], [1], [1], [0, 1, 1, 1], [], []>} : vector<16x32xf32>, vector<16x130xf32>, vector<32x130xf32> -> vector<32x130xf32>
    %21 = arith.addf %16, %20 : vector<32x130xf32>
    %22 = vector.extract_strided_slice %12 {offsets = [0, 2], sizes = [16, 130], strides = [1, 1]} : vector<16x132xf32> to vector<16x130xf32>
    %c2_18 = arith.constant 2 : index
    %c0_19 = arith.constant 0 : index
    %c0_20 = arith.constant 0 : index
    %23 = vector.load %arg3[%c2_18, %c0_19, %c0_20] : memref<3x16x32xf32, #tpu.memory_space<vmem>>, vector<1x16x32xf32>
    %24 = vector.shape_cast %23 : vector<1x16x32xf32> to vector<16x32xf32>
    %cst_21 = arith.constant dense<0.000000e+00> : vector<32x130xf32>
    %25 = tpu.matmul %24, %22, %cst_21 {dimension_numbers = #tpu.dot_dimension_numbers<[0], [0], [1], [1], [0, 1, 1, 1], [], []>} : vector<16x32xf32>, vector<16x130xf32>, vector<32x130xf32> -> vector<32x130xf32>
    %26 = arith.addf %21, %25 : vector<32x130xf32>
    %27 = vector.broadcast %4 : vector<32x1xf32> to vector<32x130xf32>
    %28 = arith.addf %26, %27 : vector<32x130xf32>
    %cst_22 = arith.constant 0.000000e+00 : f32
    %29 = vector.broadcast %cst_22 : f32 to vector<32x130xf32>
    %30 = arith.maximumf %28, %29 : vector<32x130xf32>
    %cst_23 = arith.constant dense<0.000000e+00> : vector<130xf32>
    %31 = vector.multi_reduction <add>, %30, %cst_23 [0] : vector<32x130xf32> to vector<130xf32>
    %32 = vector.shape_cast %31 : vector<130xf32> to vector<1x130xf32>
    %cst_24 = arith.constant 3.200000e+01 : f32
    %33 = vector.broadcast %cst_24 : f32 to vector<1x130xf32>
    %34 = arith.divf %32, %33 : vector<1x130xf32>
    %35 = vector.broadcast %34 : vector<1x130xf32> to vector<32x130xf32>
    %36 = arith.subf %30, %35 : vector<32x130xf32>
    %37 = arith.mulf %36, %36 : vector<32x130xf32>
    %cst_25 = arith.constant dense<0.000000e+00> : vector<130xf32>
    %38 = vector.multi_reduction <add>, %37, %cst_25 [0] : vector<32x130xf32> to vector<130xf32>
    %39 = vector.shape_cast %38 : vector<130xf32> to vector<1x130xf32>
    %cst_26 = arith.constant 3.200000e+01 : f32
    %40 = vector.broadcast %cst_26 : f32 to vector<1x130xf32>
    %41 = arith.divf %39, %40 : vector<1x130xf32>
    %42 = vector.broadcast %34 : vector<1x130xf32> to vector<32x130xf32>
    %43 = arith.subf %30, %42 : vector<32x130xf32>
    %cst_27 = arith.constant 9.99999974E-5 : f32
    %44 = vector.broadcast %cst_27 : f32 to vector<1x130xf32>
    %45 = arith.addf %41, %44 : vector<1x130xf32>
    %46 = math.rsqrt %45 : vector<1x130xf32>
    %47 = vector.broadcast %46 : vector<1x130xf32> to vector<32x130xf32>
    %48 = arith.mulf %43, %47 : vector<32x130xf32>
    %49 = vector.broadcast %5 : vector<32x1xf32> to vector<32x130xf32>
    %50 = arith.mulf %48, %49 : vector<32x130xf32>
    %51 = vector.broadcast %6 : vector<32x1xf32> to vector<32x130xf32>
    %52 = arith.addf %50, %51 : vector<32x130xf32>
    %53 = vector.extract_strided_slice %3 {offsets = [0, 1], sizes = [1, 130], strides = [1, 1]} : vector<1x132xf32> to vector<1x130xf32>
    %54 = vector.broadcast %53 : vector<1x130xf32> to vector<32x130xf32>
    %55 = arith.mulf %52, %54 : vector<32x130xf32>
    %56 = vector.extract_strided_slice %55 {offsets = [0, 0], sizes = [32, 128], strides = [1, 1]} : vector<32x130xf32> to vector<32x128xf32>
    %c0_28 = arith.constant 0 : index
    %c0_29 = arith.constant 0 : index
    %c0_30 = arith.constant 0 : index
    %57 = vector.load %arg4[%c0_28, %c0_29, %c0_30] : memref<3x32x32xf32, #tpu.memory_space<vmem>>, vector<1x32x32xf32>
    %58 = vector.shape_cast %57 : vector<1x32x32xf32> to vector<32x32xf32>
    %cst_31 = arith.constant dense<0.000000e+00> : vector<32x128xf32>
    %59 = tpu.matmul %58, %56, %cst_31 {dimension_numbers = #tpu.dot_dimension_numbers<[0], [0], [1], [1], [0, 1, 1, 1], [], []>} : vector<32x32xf32>, vector<32x128xf32>, vector<32x128xf32> -> vector<32x128xf32>
    %60 = vector.extract_strided_slice %55 {offsets = [0, 1], sizes = [32, 128], strides = [1, 1]} : vector<32x130xf32> to vector<32x128xf32>
    %c1_32 = arith.constant 1 : index
    %c0_33 = arith.constant 0 : index
    %c0_34 = arith.constant 0 : index
    %61 = vector.load %arg4[%c1_32, %c0_33, %c0_34] : memref<3x32x32xf32, #tpu.memory_space<vmem>>, vector<1x32x32xf32>
    %62 = vector.shape_cast %61 : vector<1x32x32xf32> to vector<32x32xf32>
    %cst_35 = arith.constant dense<0.000000e+00> : vector<32x128xf32>
    %63 = tpu.matmul %62, %60, %cst_35 {dimension_numbers = #tpu.dot_dimension_numbers<[0], [0], [1], [1], [0, 1, 1, 1], [], []>} : vector<32x32xf32>, vector<32x128xf32>, vector<32x128xf32> -> vector<32x128xf32>
    %64 = arith.addf %59, %63 : vector<32x128xf32>
    %65 = vector.extract_strided_slice %55 {offsets = [0, 2], sizes = [32, 128], strides = [1, 1]} : vector<32x130xf32> to vector<32x128xf32>
    %c2_36 = arith.constant 2 : index
    %c0_37 = arith.constant 0 : index
    %c0_38 = arith.constant 0 : index
    %66 = vector.load %arg4[%c2_36, %c0_37, %c0_38] : memref<3x32x32xf32, #tpu.memory_space<vmem>>, vector<1x32x32xf32>
    %67 = vector.shape_cast %66 : vector<1x32x32xf32> to vector<32x32xf32>
    %cst_39 = arith.constant dense<0.000000e+00> : vector<32x128xf32>
    %68 = tpu.matmul %67, %65, %cst_39 {dimension_numbers = #tpu.dot_dimension_numbers<[0], [0], [1], [1], [0, 1, 1, 1], [], []>} : vector<32x32xf32>, vector<32x128xf32>, vector<32x128xf32> -> vector<32x128xf32>
    %69 = arith.addf %64, %68 : vector<32x128xf32>
    %70 = vector.broadcast %7 : vector<32x1xf32> to vector<32x128xf32>
    %71 = arith.addf %69, %70 : vector<32x128xf32>
    %cst_40 = arith.constant 0.000000e+00 : f32
    %72 = vector.broadcast %cst_40 : f32 to vector<32x128xf32>
    %73 = arith.maximumf %71, %72 : vector<32x128xf32>
    %cst_41 = arith.constant dense<0.000000e+00> : vector<128xf32>
    %74 = vector.multi_reduction <add>, %73, %cst_41 [0] : vector<32x128xf32> to vector<128xf32>
    %75 = vector.shape_cast %74 : vector<128xf32> to vector<1x128xf32>
    %cst_42 = arith.constant 3.200000e+01 : f32
    %76 = vector.broadcast %cst_42 : f32 to vector<1x128xf32>
    %77 = arith.divf %75, %76 : vector<1x128xf32>
    %78 = vector.broadcast %77 : vector<1x128xf32> to vector<32x128xf32>
    %79 = arith.subf %73, %78 : vector<32x128xf32>
    %80 = arith.mulf %79, %79 : vector<32x128xf32>
    %cst_43 = arith.constant dense<0.000000e+00> : vector<128xf32>
    %81 = vector.multi_reduction <add>, %80, %cst_43 [0] : vector<32x128xf32> to vector<128xf32>
    %82 = vector.shape_cast %81 : vector<128xf32> to vector<1x128xf32>
    %cst_44 = arith.constant 3.200000e+01 : f32
    %83 = vector.broadcast %cst_44 : f32 to vector<1x128xf32>
    %84 = arith.divf %82, %83 : vector<1x128xf32>
    %85 = vector.broadcast %77 : vector<1x128xf32> to vector<32x128xf32>
    %86 = arith.subf %73, %85 : vector<32x128xf32>
    %cst_45 = arith.constant 9.99999974E-5 : f32
    %87 = vector.broadcast %cst_45 : f32 to vector<1x128xf32>
    %88 = arith.addf %84, %87 : vector<1x128xf32>
    %89 = math.rsqrt %88 : vector<1x128xf32>
    %90 = vector.broadcast %89 : vector<1x128xf32> to vector<32x128xf32>
    %91 = arith.mulf %86, %90 : vector<32x128xf32>
    %92 = vector.broadcast %8 : vector<32x1xf32> to vector<32x128xf32>
    %93 = arith.mulf %91, %92 : vector<32x128xf32>
    %94 = vector.broadcast %9 : vector<32x1xf32> to vector<32x128xf32>
    %95 = arith.addf %93, %94 : vector<32x128xf32>
    %96 = vector.extract_strided_slice %3 {offsets = [0, 2], sizes = [1, 128], strides = [1, 1]} : vector<1x132xf32> to vector<1x128xf32>
    %97 = vector.broadcast %10 : vector<32x1xf32> to vector<32x128xf32>
    %98 = arith.mulf %95, %97 : vector<32x128xf32>
    %cst_46 = arith.constant dense<0.000000e+00> : vector<128xf32>
    %99 = vector.multi_reduction <add>, %98, %cst_46 [0] : vector<32x128xf32> to vector<128xf32>
    %100 = vector.shape_cast %99 : vector<128xf32> to vector<1x128xf32>
    %c0_47 = arith.constant 0 : index
    %101 = memref.load %arg6[%c0_47] : memref<1xf32, #tpu.memory_space<smem>>
    %102 = vector.broadcast %101 : f32 to vector<1x128xf32>
    %103 = arith.addf %100, %102 : vector<1x128xf32>
    %104 = arith.mulf %103, %96 : vector<1x128xf32>
    %c0_48 = arith.constant 0 : index
    %c0_49 = arith.constant 0 : index
    %c0_50 = arith.constant 0 : index
    %105 = vector.load %arg7[%c0_48, %c0_49, %c0_50] : memref<1x1x128xf32, #tpu.memory_space<vmem>>, vector<1x1x128xf32>
    %106 = vector.shape_cast %105 : vector<1x1x128xf32> to vector<1x128xf32>
    %107 = vector.shape_cast %104 : vector<1x128xf32> to vector<1x1x128xf32>
    tpu.vector_store %arg7[%c0_48, %c0_49, %c0_50], %107 {strides = array<i32>} : memref<1x1x128xf32, #tpu.memory_space<vmem>>, vector<1x1x128xf32>,
    return
  }
  func.func @transform_0(%arg0: i32, %arg1: i32) -> (i32, i32, i32, i32) {
    %c0_i32 = arith.constant 0 : i32
    %c0_i32_0 = arith.constant 0 : i32
    %c0_i32_1 = arith.constant 0 : i32
    return %arg0, %arg1, %c0_i32, %c0_i32_0 : i32, i32, i32, i32
  }
  func.func @transform_1(%arg0: i32, %arg1: i32) -> (i32, i32, i32) {
    %c0_i32 = arith.constant 0 : i32
    %c0_i32_0 = arith.constant 0 : i32
    %c0_i32_1 = arith.constant 0 : i32
    %c0_i32_2 = arith.constant 0 : i32
    return %c0_i32, %c0_i32_0, %c0_i32_1 : i32, i32, i32
  }
  func.func @transform_2(%arg0: i32, %arg1: i32) -> (i32, i32, i32) {
    %c0_i32 = arith.constant 0 : i32
    %c0_i32_0 = arith.constant 0 : i32
    %c0_i32_1 = arith.constant 0 : i32
    %c0_i32_2 = arith.constant 0 : i32
    return %c0_i32, %c0_i32_0, %c0_i32_1 : i32, i32, i32
  }
  func.func @transform_3(%arg0: i32, %arg1: i32) -> (i32, i32) {
    %c0_i32 = arith.constant 0 : i32
    %c0_i32_0 = arith.constant 0 : i32
    %c0_i32_1 = arith.constant 0 : i32
    return %c0_i32, %c0_i32_0 : i32, i32
  }
  func.func @transform_4(%arg0: i32, %arg1: i32) -> i32 {
    %c0_i32 = arith.constant 0 : i32
    %c0_i32_0 = arith.constant 0 : i32
    return %c0_i32 : i32
  }
  func.func @transform_5(%arg0: i32, %arg1: i32) -> (i32, i32, i32) {
    %c0_i32 = arith.constant 0 : i32
    %c0_i32_0 = arith.constant 0 : i32
    return %arg0, %c0_i32, %arg1 : i32, i32, i32
  }
}

</mosaic_0001>

<bundles_post_ra>
// kernel: tpu_custom_call.1
= control target key start
LH: loop header
LB: loop body
LE: loop exit
PB: predicated region body
PF: predicated region fallthrough
CT: control target
= control target key end

     0   :  { %s2067_s0 = inlined_call_operand.vmem [shape: f32[2,1,17,132], index: 0, kind: input, shape index: {}]   ;;  %s2068_s1 = inlined_call_operand.vmem [shape: f32[3,16,32], index: 1, kind: input, shape index: {}]   ;;  %s2069_s2 = inlined_call_operand.vmem [shape: f32[3,32,32], index: 2, kind: input, shape index: {}]   ;;  %s2070_s3 = inlined_call_operand.vmem [shape: f32[32,7], index: 3, kind: input, shape index: {}]   ;;  %s2071_s4 = inlined_call_operand.<no memory space> [shape: f32[1], index: 4, kind: input, shape index: {}]   ;;  %s2072_s5 = inlined_call_operand.hbm [shape: f32[2,1,128], index: 5, kind: output, shape index: {}]  }
   0x1   :  { %10 = sst [smem:[#allocation2]] %s2071_s4 }
   0x2   :  { %11 = vsyncpa [#allocation4], 0 }
   0x3   :  { %13 = vsyncpa [#allocation4 + $0x1], 0  ;;  %s1698_s20 = smov 0   ;;  %s1700_s21 = smov 0  }
   0x4   :  { %s1702_s22 = smov 0   ;;  %s1704_s23 = smov 0  }
   0x5   :  { %s1706_s24 = smov 0   ;;  %s1708_s25 = smov 0  }
   0x6 LB: > { %s1357_s4 = sadd.s32 4294967295, %s1653_s25   ;;  %s1358_s26 = sadd.s32 4294967294, %s1653_s25   ;;  %s1653_s25 = sphi %s1708_s25, %s19_s25   ;;  %s1649_s24 = sphi %s1706_s24, %s2079_s24   ;;  %s1645_s23 = sphi %s1704_s23, %s2078_s23   ;;  %s1641_s22 = sphi %s1702_s22, %s2077_s22   ;;  %s1637_s21 = sphi %s1700_s21, %s2076_s21   ;;  %s1633_s20 = sphi %s1698_s20, %s2075_s20  }
   0x7   : > { %s31_s27 = sadd.s32 1, %s1649_s24  ;;  %s152_s28 = sadd.s32 1, %s1641_s22 }
   0x8   : > { %p33_p0 = scmp.ge.s32.totalorder %s31_s27, 2  ;;  %p162_p1 = scmp.ne.s32.totalorder %s1641_s22, %s1637_s21 }
   0x9   : > { %p163_p2 = scmp.eq.s32.totalorder %s1357_s4, 1  ;;  %p168_p3 = scmp.ne.s32.totalorder %s1637_s21, %s1633_s20 }
   0xa   : > { %s2081_s27 = smov (%p33_p0, %s31_s27), 0  ;;  %p169_p5 = scmp.eq.s32.totalorder %s1358_s26, 1 }
   0xb   : > { %p1738_p4 = por %p163_p2, %p162_p1  ;;  %s147_s30 = ssub.s32 %s1649_s24, %s2081_s27 }
   0xc   : > { %p1361_p6 = scmp.ge.s32.totalorder %s1653_s25, 1  ;;  %p150_p7 = scmp.eq.s32.totalorder %s147_s30, 0 }
   0xd   : > { %p1745_p8 = por %p169_p5, %p168_p3  ;;  %p211_p9 = scmp.lt.s32.totalorder %s1653_s25, 3 }
   0xe   : > { %s1751_s7 = scalar_select %p150_p7, %s1641_s22, %s152_s28  }
   0xf   : > { %p212_p10 = pnand %p1361_p6, %p211_p9 }
  0x10   : > { %p242_p11 = scmp.lt.s32.totalorder (!%p212_p10), %s1645_s23, 1  ;;  %s1655_s17 = smov (!%p212_p10), 127  }
  0x11   : > { %215 = sbr.rel (%p212_p10) target bundleno = 974 (0x3ce), region = 40  ;;  %s1656_s4 = smov (!%p212_p10), 126  }
  0x12   : > { %s1280_s19 = scalar_lea.hbm (!%p212_p10), %s2072_s5, %s1645_s23  ;;  %s1595_s12 = scalar_lea.hbm (!%p212_p10), %s2072_s5, 2 }
  0x13   : > { %s1284_s30 = sshll.u32 (!%p212_p10), %s1280_s19, 4  ;;  %s1285_s30 = int_to_ptr.hbm [resolvable:$true] %s1284_s30 }
  0x14   : > { %s1589_s9 = sshra.s32 (!%p212_p10), %s1285_s30, 4  ;;  %s1590_s9 = int_to_ptr.hbm [resolvable:$true] %s1589_s9 }
  0x15   : > { %p1596_p1 = scmp.lt.s32.totalorder (!%p212_p10), %s1590_s9, %s2072_s5 }
  0x16   : > { %v1363_v0 = vld [vmem:[%s2068_s1 + $0x10] sm:$0xff]  ;;  %s243_s10 = scalar_select %p242_p11, %s1645_s23, 1  ;;  %v1364_v1 = vld [vmem:[%s2068_s1 + $0x18] sm:$0xff]  ;;  %v1381_v14 = vld [vmem:[%s2068_s1 + $0x20] sm:$0xff]  ;;  %vm316_vm0 = vcmask 1039360   ;;  %vm539_vm1 = vcmask 1031168  }
  0x17   : > { %272 = vxpose.xlu1.b32.start [1/2] (short) (narrow) %v1363_v0, 32  ;;  %v1382_v16 = vld [vmem:[%s2068_s1 + $0x28] sm:$0xff]  ;;  %v267_v18 = vld [vmem:[%s2068_s1] sm:$0xff]  ;;  %vm323_vm2 = vcmask 130048   ;;  %v1657_v43 = vmov 0   ;;  %v1828_v46 = vld [vmem:[%s2070_s3 + $0x18] sm:$0xff] }
  0x18   : > { %s1419_s11 = smul.u32 48, %s243_s10  ;;  %v268_v19 = vld [vmem:[%s2068_s1 + $0x8] sm:$0xff]  ;;  %v1813_v42 = vld [vmem:[%s2070_s3] sm:$0xff]  ;;  %1506 = vset.pattern.permute.xlu2 %v1657_v43  ;;  %v1658_v47 = vmov 1   ;;  %v1837_v50 = vld [vmem:[%s2070_s3 + $0x10] sm:$0xff]  ;;  %v1659_v54 = vmov 2  }
  0x19   : > { %v1821_v45 = vld [vmem:[%s2070_s3 + $0x8] sm:$0xff]  ;;  %vm669_vm3 = vcmask 15360   ;;  %vm900_vm11 = vcmask 261120   ;;  %s1591_s10 = scalar_lea.hbm %s1590_s9, 1 }
  0x1a   : > { %s1764_s16 = scalar_lea.vmem %s2067_s0, %s1419_s11  ;;  %p1592_p12 = scmp.ne.s32.totalorder %s1590_s9, %s1591_s10 }
  0x1b   : > { %v253_v2 = vld [vmem:[%s1764_s16 + $0x10] sm:$0xff]  ;;  %v254_v3 = vld [vmem:[%s1764_s16 + $0x18] sm:$0xff]  ;;  %v1769_v4 = vld [vmem:[%s1764_s16 + $0x20] ss:$0 sm:$0xff]  ;;  %p1597_p2 = scmp.lt.s32.totalorder %s1595_s12, %s1591_s10 }
  0x1c   : > { %v1772_v5 = vld [vmem:[%s1764_s16 + $0x28] ss:$0 sm:$0xff]  ;;  %v265_v6 = vmul.f32 %v1769_v4, %v253_v2  ;;  %v251_v8 = vld [vmem:[%s1764_s16] sm:$0xff]  ;;  %p1593_p13 = pnand %p1592_p12, %p1738_p4 }
  0x1d   : > { %v266_v7 = vmul.f32 %v1772_v5, %v254_v3  ;;  %v252_v9 = vld [vmem:[%s1764_s16 + $0x8] sm:$0xff]  ;;  %v263_v11 = vmul.f32 %v1769_v4, %v251_v8  ;;  %p1598_p3 = por %p1597_p2, %p1596_p1 }
  0x1e   : > { %v264_v12 = vmul.f32 %v1772_v5, %v252_v9  ;;  %p1594_p0 = pneg %p1593_p13 }
  0x1f   : > { %273 = vxpose.xlu1.b32.end [2/2] (short) (narrow) %v1364_v1, 32  ;;  %v1486_v10 = vpack.i.bf16 %v266_v7, %v265_v6  ;;  %v1496_v15 = vpack.i.bf16 %v265_v6, %v266_v7 }
  0x20   : > { %v1491_v13 = vpack.i.bf16 %v264_v12, %v263_v11  ;;  %v1501_v17 = vpack.i.bf16 %v263_v11, %v264_v12  ;;  %p1599_p5 = pnand %p1598_p3, %p1594_p0 }
  0x21   : > { %1487 = vrot.lane.b32.xlu0 %v1486_v10, %s1655_s17  ;;  %1497 = vrot.lane.b32.xlu2 %v1496_v15, %s1656_s4 }
  0x29   : > { %1492 = vrot.lane.b32.xlu0 %v1491_v13, %s1655_s17  ;;  %1502 = vrot.lane.b32.xlu2 %v1501_v17, %s1656_s4 }
  0x31   : > { %626 = vperm.xlu2 %1506, %v1813_v42  }
  0x37   : > { %499 = vxpose.xlu1.b32.start [1/2] (short) (narrow) %v1381_v14, 32 }
  0x39   : > { %631 = vperm.xlu2 %1506, %v1821_v45  }
  0x3f   : > { %500 = vxpose.xlu1.b32.end [2/2] (short) (narrow) %v1382_v16, 32 }
  0x41   : > { %636 = vperm.xlu2 %1506, %v1837_v50  }
  0x49   : > { %641 = vperm.xlu2 %1506, %v1828_v46  }
  0x4b   : > { %394 = vxpose.xlu0.b32.start [1/2] (short) (narrow) %v267_v18, 32 }
  0x51   : > { %1508 = vset.pattern.permute.xlu2 %v1658_v47 }
  0x52   : > { %771 = vperm.xlu2 %1508, %v1837_v50  }
  0x53   : > { %395 = vxpose.xlu0.b32.end [2/2] (short) (narrow) %v268_v19, 32 }
  0x5a   : > { %1509 = vset.pattern.permute.xlu2 %v1659_v54 }
  0x5b   : > { %799 = vperm.xlu2 %1509, %v1828_v46  }
  0x63   : > { %814 = vrot.lane.b32.xlu2 %v1772_v5, %s1655_s17 }
  0x64   : > { %1510 = vset.pattern.permute.xlu2 %v1658_v47 }
  0x6b   : > { %767 = vperm.xlu2 %1510, %v1821_v45  }
  0x73   : > { %1511 = vset.pattern.permute.xlu2 %v1659_v54 }
  0x74   : > { %795 = vperm.xlu2 %1511, %v1837_v50  }
  0x7b   : > { %v1498_v28 = vpop.permute.xlu2 %1497 }
  0x7c   : > { %v1500_v29 = vunpack.i.h.bf16 %v1498_v28  ;;  %v1499_v30 = vunpack.i.l.bf16 %v1498_v28  ;;  %1512 = vset.pattern.permute.xlu2 %v1658_v47 }
  0x7d   : > { %763 = vperm.xlu2 %1512, %v1813_v42  }
  0x7e   : > { %v541_v31 = vsel %vm539_vm1, %v1500_v29, %v1499_v30 }
  0x83   : > { %v1503_v33 = vpop.permute.xlu2 %1502 }
  0x84   : > { %v1505_v34 = vunpack.i.h.bf16 %v1503_v33  ;;  %v1504_v35 = vunpack.i.l.bf16 %v1503_v33 }
  0x85   : > { %1513 = vset.pattern.permute.xlu2 %v1659_v54 }
  0x86   : > { %v540_v37 = vsel %vm539_vm1, %v1505_v34, %v1504_v35  ;;  %791 = vperm.xlu2 %1513, %v1821_v45  }
  0x8b   : > { %v627_v62 = vpop.permute.xlu2 %626 }
  0x8e   : > { %787 = vperm.xlu2 %1513, %v1813_v42  }
  0x92   : > { %1507 = vset.pattern.permute.xlu1 %v1658_v47 }
  0x93   : > { %v1488_v20 = vpop.permute.xlu0 %1487 }
  0x94   : > { %v1490_v21 = vunpack.i.h.bf16 %v1488_v20  ;;  %v1489_v22 = vunpack.i.l.bf16 %v1488_v20 }
  0x96   : > { %v318_v23 = vsel %vm316_vm0, %v1489_v22, %v1490_v21 }
  0x97   : > { %350 = vmatpush.msra.mxu0 %v318_v23  ;;  %1413 = vmatpush.msra.mxu1 %v318_v23 }
  0x98   : > { %1414 = vmatpush.msra.mxu2 %v318_v23  ;;  %1415 = vmatpush.msra.mxu3 %v318_v23 }
  0x9b   : > { %v1493_v24 = vpop.permute.xlu0 %1492 }
  0x9c   : > { %v1495_v25 = vunpack.i.h.bf16 %v1493_v24  ;;  %v1494_v26 = vunpack.i.l.bf16 %v1493_v24 }
  0x9e   : > { %v317_v27 = vsel %vm316_vm0, %v1494_v26, %v1495_v25 }
  0x9f   : > { %351 = vmatpush.msra.mxu0 %v317_v27  ;;  %1416 = vmatpush.msra.mxu1 %v317_v27 }
  0xa0   : > { %1417 = vmatpush.msra.mxu2 %v317_v27  ;;  %1418 = vmatpush.msra.mxu3 %v317_v27  ;;  %v1660_v27 = vmov 32.0  }
  0xa1   : > { %379 = vmatpush.msrb.mxu1 %v1490_v21  ;;  %572 = vmatpush.msrb.mxu0 %v541_v31  ;;  %1567 = vrcp.f32 %v1660_v27 }
  0xa2   : > { %481 = vmatpush.msrb.mxu3 %v266_v7  ;;  %452 = vmatpush.msrb.mxu2 %v265_v6 }
  0xa3   : > { %380 = vmatpush.msrb.mxu1 %v1495_v25  ;;  %573 = vmatpush.msrb.mxu0 %v540_v37 }
  0xa4   : > { %482 = vmatpush.msrb.mxu3 %v264_v12  ;;  %453 = vmatpush.msrb.mxu2 %v263_v11 }
  0xa9   : > { %775 = vperm.xlu1 %1507, %v1828_v46  }
  0xbb   : > { %v288_v32 = vpop.trf.xlu1 }
  0xbc   : > { %1365 = vmatmul.msk.f32.vlgmr.msra.gmra.mxu0 %vm323_vm2, %v288_v32 }
  0xc3   : > { %v289_v36 = vpop.trf.xlu1 }
  0xc4   : > { %1366 = vmatmul.msk.f32.vlgmr.msra.gmra.mxu1 %vm323_vm2, %v289_v36 }
  0xc5   : > { %601 = vmatpush.msra.mxu1 %v1499_v30 }
  0xc7   : > { %602 = vmatpush.msra.mxu1 %v1504_v35 }
  0xcb   : > { %v290_v38 = vpop.trf.xlu1 }
  0xcc   : > { %1369 = vmatmul.msk.f32.vlgmr.msrb.gmra.mxu1 %vm323_vm2, %v288_v32  ;;  %1367 = vmatmul.msk.f32.vlgmr.msra.gmra.mxu2 %vm323_vm2, %v290_v38 }
  0xd1   : > { %812 = vrot.lane.b32.xlu0 %v1769_v4, %s1655_s17  ;;  %v632_v4 = vpop.permute.xlu2 %631 }
  0xd3   : > { %v291_v39 = vpop.trf.xlu1 }
  0xd4   : > { %1370 = vmatmul.msk.f32.gmra.mxu1 %vm323_vm2, %v289_v36  ;;  %1368 = vmatmul.msk.f32.vlgmr.msra.gmra.mxu3 %vm323_vm2, %v291_v39 }
  0xd9   : > { %v637_v9 = vpop.permute.xlu2 %636 }
  0xdb   : > { %v515_v40 = vpop.trf.xlu1 }
  0xdc   : > { %1371 = vmatmul.msk.f32.gmra.mxu1 %vm323_vm2, %v290_v38  ;;  %1383 = vmatmul.msk.f32.vlgmr.msrb.gmra.mxu0 %vm323_vm2, %v515_v40 }
  0xe1   : > { %v642_v29 = vpop.permute.xlu2 %641 }
  0xe3   : > { %v516_v41 = vpop.trf.xlu1 }
  0xe4   : > { %1372 = vmatmul.msk.f32.gmra.mxu1 %vm323_vm2, %v291_v39  ;;  %1384 = vmatmul.msk.f32.gmra.mxu0 %vm323_vm2, %v516_v41 }
  0xeb   : > { %v517_v44 = vpop.trf.xlu1 }
  0xec   : > { %1387 = vmatmul.msk.f32.vlgmr.msra.gmra.mxu1 %vm323_vm2, %v515_v40  ;;  %1385 = vmatmul.msk.f32.gmra.mxu0 %vm323_vm2, %v517_v44  ;;  %v1568_v40 = vpop.eup %1567 }
  0xed   : > { %vm688_vm4 = vweird.f32 %v1568_v40 }
  0xef   : > { %v410_v48 = vpop.trf.xlu0 }
  0xf0   : > { %1373 = vmatmul.msk.f32.vlgmr.msrb.gmra.mxu2 %vm323_vm2, %v410_v48  ;;  %1377 = vmatmul.msk.f32.vlgmr.msrb.gmra.mxu3 %vm323_vm2, %v410_v48 }
  0xf3   : > { %v518_v49 = vpop.trf.xlu1 }
  0xf4   : > { %1388 = vmatmul.msk.f32.gmra.mxu1 %vm323_vm2, %v516_v41  ;;  %1386 = vmatmul.msk.f32.gmra.mxu0 %vm323_vm2, %v518_v49 }
  0xf7   : > { %v411_v51 = vpop.trf.xlu0 }
  0xf8   : > { %1374 = vmatmul.msk.f32.gmra.mxu2 %vm323_vm2, %v411_v51  ;;  %1378 = vmatmul.msk.f32.gmra.mxu3 %vm323_vm2, %v411_v51 }
  0xfc   : > { %1389 = vmatmul.msk.f32.gmra.mxu1 %vm323_vm2, %v517_v44 }
  0xff   : > { %v412_v52 = vpop.trf.xlu0 }
 0x100   : > { %1375 = vmatmul.msk.f32.gmra.mxu2 %vm323_vm2, %v412_v52  ;;  %1379 = vmatmul.msk.f32.gmra.mxu3 %vm323_vm2, %v412_v52 }
 0x104   : > { %1390 = vmatmul.msk.f32.gmra.mxu1 %vm323_vm2, %v518_v49 }
 0x107   : > { %v413_v53 = vpop.trf.xlu0 }
 0x108   : > { %1376 = vmatmul.msk.f32.gmra.mxu2 %vm323_vm2, %v413_v53  ;;  %1380 = vmatmul.msk.f32.gmra.mxu3 %vm323_vm2, %v413_v53 }
 0x139   : > { %v353_v59 = vpop.f32.mrf.mxu0 }
 0x141   : > { %v356_v55 = vpop.f32.mrf.mxu1 }
 0x149   : > { %v382_v56 = vpop.f32.mrf.mxu1 }
 0x14f   : > { %v359_v63 = vpop.f32.mrf.mxu2 }
 0x151   : > { %v385_v57 = vpop.f32.mrf.mxu1 }
 0x157   : > { %v362_v61 = vpop.f32.mrf.mxu3 }
 0x159   : > { %v388_v58 = vpop.f32.mrf.mxu1  ;;  %v575_v0 = vpop.f32.mrf.mxu0 }
 0x161   : > { %v391_v60 = vpop.f32.mrf.mxu1  ;;  %v578_v5 = vpop.f32.mrf.mxu0 }
 0x169   : > { %v604_v1 = vpop.f32.mrf.mxu1  ;;  %v581_v13 = vpop.f32.mrf.mxu0 }
 0x171   : > { %v607_v6 = vpop.f32.mrf.mxu1  ;;  %v584_v35 = vpop.f32.mrf.mxu0 }
 0x173   : > { %v455_v2 = vpop.f32.mrf.mxu2  ;;  %v484_v3 = vpop.f32.mrf.mxu3 }
 0x174   : > { %v485_v11 = vadd.f32 %v484_v3, %v382_v56  ;;  %v456_v15 = vadd.f32 %v455_v2, %v353_v59 }
 0x176   : > { %v617_v17 = vadd.f32 %v604_v1, %v485_v11  ;;  %v616_v23 = vadd.f32 %v575_v0, %v456_v15 }
 0x178   : > { %v1862_v28 = vadd.f32 %v627_v62, %v617_v17  ;;  %v644_v32 = vadd.f32 %v627_v62, %v616_v23  ;;  %v1872_v62 = vpop.permute.xlu2 %771 }
 0x179   : > { %v610_v14 = vpop.f32.mrf.mxu1 }
 0x17a   : > { %v653_v37 = vmax.f32 %v1862_v28, 0.0  ;;  %v652_v48 = vmax.f32 %v644_v32, 0.0 }
 0x17b   : > { %v458_v7 = vpop.f32.mrf.mxu2  ;;  %v487_v8 = vpop.f32.mrf.mxu3 }
 0x17c   : > { %v488_v10 = vadd.f32 %v487_v8, %v385_v57  ;;  %v459_v12 = vadd.f32 %v458_v7, %v356_v55  ;;  %v670_v54 = vsel %vm669_vm3, %v653_v37, 0.0  ;;  %v684_v55 = vmul.f32 32.0, %v1568_v40 }
 0x17e   : > { %v619_v16 = vadd.f32 %v607_v6, %v488_v10  ;;  %v618_v20 = vadd.f32 %v578_v5, %v459_v12  ;;  %v685_v2 = vsub.f32 1.0, %v684_v55 }
 0x180   : > { %v1860_v24 = vadd.f32 %v632_v4, %v619_v16  ;;  %v646_v30 = vadd.f32 %v632_v4, %v618_v20  ;;  %v686_v7 = vmul.f32 %v1568_v40, %v685_v2  ;;  %v1875_v12 = vpop.permute.xlu2 %799 }
 0x181   : > { %v613_v36 = vpop.f32.mrf.mxu1 }
 0x182   : > { %v655_v33 = vmax.f32 %v1860_v24, 0.0  ;;  %v654_v41 = vmax.f32 %v646_v30, 0.0 }
 0x183   : > { %v461_v18 = vpop.f32.mrf.mxu2  ;;  %v490_v19 = vpop.f32.mrf.mxu3 }
 0x184   : > { %v462_v21 = vadd.f32 %v461_v18, %v359_v63  ;;  %v491_v22 = vadd.f32 %v490_v19, %v388_v58  ;;  %v671_v49 = vsel %vm669_vm3, %v655_v33, 0.0  ;;  %v660_v56 = vadd.f32 %v654_v41, %v652_v48 }
 0x185   : > { %v672_v63 = vadd.f32 %v671_v49, %v670_v54 }
 0x186   : > { %v620_v25 = vadd.f32 %v581_v13, %v462_v21  ;;  %v621_v26 = vadd.f32 %v610_v14, %v491_v22  ;;  %v687_v13 = vadd.f32 %v1568_v40, %v686_v7 }
 0x188   : > { %v1864_v31 = vadd.f32 %v637_v9, %v621_v26  ;;  %v648_v34 = vadd.f32 %v637_v9, %v620_v25  ;;  %v1877_v18 = vsel %vm688_vm4, %v1568_v40, %v687_v13  ;;  %v1887_v27 = vpop.permute.xlu2 %814 }
 0x18a   : > { %v657_v43 = vmax.f32 %v1864_v31, 0.0  ;;  %v656_v51 = vmax.f32 %v648_v34, 0.0 }
 0x18b   : > { %v464_v38 = vpop.f32.mrf.mxu2  ;;  %v493_v39 = vpop.f32.mrf.mxu3 }
 0x18c   : > { %v465_v44 = vadd.f32 %v464_v38, %v362_v61  ;;  %v494_v47 = vadd.f32 %v493_v39, %v391_v60  ;;  %v673_v57 = vsel %vm669_vm3, %v657_v43, 0.0  ;;  %v661_v0 = vadd.f32 %v660_v56, %v656_v51 }
 0x18d   : > { %v674_v1 = vadd.f32 %v673_v57, %v672_v63 }
 0x18e   : > { %v622_v52 = vadd.f32 %v584_v35, %v465_v44  ;;  %v623_v53 = vadd.f32 %v613_v36, %v494_v47 }
 0x190   : > { %v650_v58 = vadd.f32 %v642_v29, %v622_v52  ;;  %v651_v59 = vadd.f32 %v642_v29, %v623_v53  ;;  %v768_v56 = vpop.permute.xlu2 %767 }
 0x192   : > { %v658_v61 = vmax.f32 %v650_v58, 0.0  ;;  %v659_v60 = vmax.f32 %v651_v59, 0.0 }
 0x194   : > { %v662_v3 = vadd.f32 %v661_v0, %v658_v61  ;;  %v675_v4 = vsel %vm669_vm3, %v659_v60, 0.0 }
 0x195   : > { %v676_v5 = vadd.f32 %v675_v4, %v674_v1 }
 0x196   : > { %v663_v6 = vrot.slane %v662_v3, 4 }
 0x197   : > { %v677_v8 = vrot.slane %v676_v5, 4 }
 0x198   : > { %v664_v9 = vadd.f32 %v663_v6, %v662_v3  ;;  %v796_v4 = vpop.permute.xlu2 %795 }
 0x199   : > { %v678_v10 = vadd.f32 %v677_v8, %v676_v5 }
 0x19a   : > { %v665_v11 = vrot.slane %v664_v9, 2 }
 0x19b   : > { %v679_v14 = vrot.slane %v678_v10, 2 }
 0x19c   : > { %v666_v15 = vadd.f32 %v665_v11, %v664_v9 }
 0x19d   : > { %v680_v16 = vadd.f32 %v679_v14, %v678_v10 }
 0x19e   : > { %v667_v17 = vrot.slane %v666_v15, 1 }
 0x19f   : > { %v681_v19 = vrot.slane %v680_v16, 1 }
 0x1a0   : > { %v668_v20 = vadd.f32 %v667_v17, %v666_v15  ;;  %v1921_v10 = vpop.permute.xlu2 %763 }
 0x1a1   : > { %v682_v21 = vadd.f32 %v681_v19, %v680_v16 }
 0x1a2   : > { %v690_v22 = vmul.f32 %v1877_v18, %v668_v20 }
 0x1a3   : > { %v691_v23 = vmul.f32 %v1877_v18, %v682_v21 }
 0x1a4   : > { %v1881_v24 = vsub.f32 %v652_v48, %v690_v22  ;;  %v1883_v25 = vsub.f32 %v654_v41, %v690_v22  ;;  %v1885_v26 = vsub.f32 %v656_v51, %v690_v22  ;;  %v1897_v32 = vsub.f32 %v658_v61, %v690_v22 }
 0x1a5   : > { %v1889_v28 = vsub.f32 %v659_v60, %v691_v23  ;;  %v1891_v29 = vsub.f32 %v653_v37, %v691_v23  ;;  %v1893_v30 = vsub.f32 %v655_v33, %v691_v23  ;;  %v1895_v31 = vsub.f32 %v657_v43, %v691_v23 }
 0x1a6   : > { %v700_v34 = vmul.f32 %v1881_v24, %v1881_v24  ;;  %v702_v35 = vmul.f32 %v1883_v25, %v1883_v25  ;;  %v704_v37 = vmul.f32 %v1885_v26, %v1885_v26  ;;  %v706_v44 = vmul.f32 %v1897_v32, %v1897_v32 }
 0x1a7   : > { %v701_v36 = vmul.f32 %v1891_v29, %v1891_v29  ;;  %v703_v38 = vmul.f32 %v1893_v30, %v1893_v30  ;;  %v705_v33 = vmul.f32 %v1895_v31, %v1895_v31  ;;  %v707_v40 = vmul.f32 %v1889_v28, %v1889_v28 }
 0x1a8   : > { %v708_v39 = vadd.f32 %v702_v35, %v700_v34  ;;  %v792_v22 = vpop.permute.xlu2 %791 }
 0x1a9   : > { %v717_v41 = vsel %vm669_vm3, %v701_v36, 0.0  ;;  %v718_v43 = vsel %vm669_vm3, %v703_v38, 0.0  ;;  %v720_v49 = vsel %vm669_vm3, %v705_v33, 0.0  ;;  %v722_v53 = vsel %vm669_vm3, %v707_v40, 0.0 }
 0x1aa   : > { %v709_v47 = vadd.f32 %v708_v39, %v704_v37  ;;  %v719_v48 = vadd.f32 %v718_v43, %v717_v41  ;;  %v776_v37 = vpop.permute.xlu1 %775 }
 0x1ac   : > { %v710_v51 = vadd.f32 %v709_v47, %v706_v44  ;;  %v721_v52 = vadd.f32 %v720_v49, %v719_v48  ;;  %v813_v49 = vpop.permute.xlu0 %812 }
 0x1ae   : > { %v711_v54 = vrot.slane %v710_v51, 4  ;;  %v723_v55 = vadd.f32 %v722_v53, %v721_v52 }
 0x1b0   : > { %v712_v57 = vadd.f32 %v711_v54, %v710_v51  ;;  %v724_v58 = vrot.slane %v723_v55, 4 }
 0x1b2   : > { %v713_v59 = vrot.slane %v712_v57, 2  ;;  %v725_v63 = vadd.f32 %v724_v58, %v723_v55 }
 0x1b4   : > { %v714_v0 = vadd.f32 %v713_v59, %v712_v57  ;;  %v726_v61 = vrot.slane %v725_v63, 2 }
 0x1b6   : > { %v715_v60 = vrot.slane %v714_v0, 1  ;;  %v727_v1 = vadd.f32 %v726_v61, %v725_v63 }
 0x1b8   : > { %v716_v2 = vadd.f32 %v715_v60, %v714_v0  ;;  %v728_v3 = vrot.slane %v727_v1, 1 }
 0x1ba   : > { %v729_v5 = vadd.f32 %v728_v3, %v727_v1  ;;  %v730_v6 = vmul.f32 %v716_v2, %v1877_v18 }
 0x1bc   : > { %v731_v7 = vmul.f32 %v729_v5, %v1877_v18  ;;  %v732_v8 = vadd.f32 0.0001, %v730_v6 }
 0x1be   : > { %v733_v9 = vadd.f32 0.0001, %v731_v7  ;;  %1569 = vrsqrt.f32 %v732_v8  ;;  %vm740_vm6 = vweird.f32 %v732_v8 }
 0x1c0   : > { %1571 = vrsqrt.f32 %v733_v9  ;;  %vm750_vm9 = vweird.f32 %v733_v9 }
 0x1c4   : > { %v1570_v11 = vpop.eup %1569 }
 0x1c5   : > { %v735_v13 = vmul.f32 %v1570_v11, %v732_v8  ;;  %vm741_vm5 = vweird.f32 %v1570_v11  ;;  %v1403_v8 = vld [vmem:[%s2069_s2 + $0x40] sm:$0xff] }
 0x1c6   : > { %v1572_v14 = vpop.eup %1571  ;;  %vm742_vm8 = vmor %vm740_vm6, %vm741_vm5  ;;  %1020 = vxpose.xlu0.b32.start [1/4] (short) (narrow) %v1403_v8, 32 }
 0x1c7   : > { %v736_v15 = vmul.f32 %v1570_v11, %v735_v13  ;;  %v745_v16 = vmul.f32 %v1572_v14, %v733_v9  ;;  %vm751_vm7 = vweird.f32 %v1572_v14  ;;  %v1405_v13 = vld [vmem:[%s2069_s2 + $0x50] sm:$0xff] }
 0x1c8   : > { %vm752_vm10 = vmor %vm750_vm9, %vm751_vm7 }
 0x1c9   : > { %v737_v17 = vmul.f32 0.5, %v736_v15  ;;  %v746_v19 = vmul.f32 %v1572_v14, %v745_v16  ;;  %v1406_v15 = vld [vmem:[%s2069_s2 + $0x58] sm:$0xff]  ;;  %v827_v16 = vld [vmem:[%s2069_s2] sm:$0xff] }
 0x1cb   : > { %v738_v20 = vsub.f32 1.5, %v737_v17  ;;  %v747_v21 = vmul.f32 0.5, %v746_v19 }
 0x1cd   : > { %v739_v23 = vmul.f32 %v1570_v11, %v738_v20  ;;  %v748_v34 = vsub.f32 1.5, %v747_v21  ;;  %v828_v21 = vld [vmem:[%s2069_s2 + $0x8] sm:$0xff] }
 0x1cf   : > { %v743_v35 = vsel %vm742_vm8, %v1570_v11, %v739_v23  ;;  %v749_v36 = vmul.f32 %v1572_v14, %v748_v34  ;;  %v1393_v11 = vld [vmem:[%s2069_s2 + $0x30] sm:$0xff] }
 0x1d0   : > { %v758_v38 = vmul.f32 %v743_v35, %v1885_v26  ;;  %v756_v33 = vmul.f32 %v743_v35, %v1883_v25  ;;  %v760_v39 = vmul.f32 %v743_v35, %v1897_v32  ;;  %v754_v41 = vmul.f32 %v743_v35, %v1881_v24 }
 0x1d1   : > { %v753_v40 = vsel %vm752_vm10, %v1572_v14, %v749_v36  ;;  %v816_v24 = vsel %vm316_vm0, %v813_v49, %v1887_v27  ;;  %v1394_v14 = vld [vmem:[%s2069_s2 + $0x38] sm:$0xff]  ;;  %v829_v36 = vld [vmem:[%s2069_s2 + $0x10] sm:$0xff] }
 0x1d2   : > { %v782_v43 = vmul.f32 %v1872_v62, %v758_v38  ;;  %v757_v44 = vmul.f32 %v753_v40, %v1893_v30  ;;  %v780_v47 = vmul.f32 %v768_v56, %v756_v33  ;;  %v759_v48 = vmul.f32 %v753_v40, %v1895_v31  ;;  %v788_v30 = vpop.permute.xlu2 %787 }
 0x1d3   : > { %v761_v51 = vmul.f32 %v753_v40, %v1889_v28  ;;  %v784_v52 = vmul.f32 %v776_v37, %v760_v39  ;;  %v778_v54 = vmul.f32 %v1921_v10, %v754_v41 }
 0x1d4   : > { %v781_v26 = vmul.f32 %v768_v56, %v757_v44  ;;  %v804_v53 = vadd.f32 %v792_v22, %v780_v47  ;;  %v806_v25 = vadd.f32 %v796_v4, %v782_v43  ;;  %v783_v58 = vmul.f32 %v1872_v62, %v759_v48 }
 0x1d5   : > { %v785_v32 = vmul.f32 %v776_v37, %v761_v51  ;;  %v808_v55 = vadd.f32 %v1875_v12, %v784_v52  ;;  %v802_v0 = vadd.f32 %v788_v30, %v778_v54 }
 0x1d6   : > { %v805_v57 = vadd.f32 %v792_v22, %v781_v26  ;;  %v821_v28 = vmul.f32 %v816_v24, %v804_v53  ;;  %v823_v61 = vmul.f32 %v816_v24, %v806_v25  ;;  %v807_v1 = vadd.f32 %v796_v4, %v783_v58 }
 0x1d7   : > { %v809_v31 = vadd.f32 %v1875_v12, %v785_v32  ;;  %v825_v59 = vmul.f32 %v816_v24, %v808_v55  ;;  %v819_v3 = vmul.f32 %v816_v24, %v802_v0  ;;  %v755_v12 = vmul.f32 %v753_v40, %v1891_v29  ;;  %v1391_v29 = vld [vmem:[%s2069_s2 + $0x20] sm:$0xff]  ;;  %v830_v40 = vld [vmem:[%s2069_s2 + $0x18] sm:$0xff] }
 0x1d8   : > { %v822_v56 = vmul.f32 %v1887_v27, %v805_v57  ;;  %v824_v62 = vmul.f32 %v1887_v27, %v807_v1 }
 0x1d9   : > { %v826_v63 = vmul.f32 %v1887_v27, %v809_v31  ;;  %998 = vmatpush.msra.mxu3 %v825_v59  ;;  %v779_v6 = vmul.f32 %v1921_v10, %v755_v12  ;;  %v1404_v10 = vld [vmem:[%s2069_s2 + $0x48] sm:$0xff] }
 0x1da   : > { %v1544_v60 = vpack.i.bf16 %v822_v56, %v821_v28  ;;  %v1519_v5 = vpack.i.bf16 %v824_v62, %v823_v61  ;;  %1021 = vxpose.xlu0.b32.cont [2/4] (short) (narrow) %v1404_v10, 32 }
 0x1db   : > { %999 = vmatpush.msra.mxu3 %v823_v61  ;;  %v1514_v2 = vpack.i.bf16 %v826_v63, %v825_v59  ;;  %v803_v7 = vadd.f32 %v788_v30, %v779_v6  ;;  %v1663_v6 = vmov 4  }
 0x1dc   : > { %1545 = vrot.lane.b32.xlu1 %v1544_v60, %s1656_s4 }
 0x1dd   : > { %1515 = vrot.lane.b32.xlu2 %v1514_v2, %s1655_s17  ;;  %1000 = vmatpush.msra.mxu3 %v821_v28  ;;  %v820_v4 = vmul.f32 %v1887_v27, %v803_v7  ;;  %v1392_v27 = vld [vmem:[%s2069_s2 + $0x28] sm:$0xff] }
 0x1df   : > { %1001 = vmatpush.msra.mxu3 %v819_v3  ;;  %v1529_v9 = vpack.i.bf16 %v820_v4, %v819_v3  ;;  %v1664_v4 = vmov 6  }
 0x1e2   : > { %1022 = vxpose.xlu0.b32.cont [3/4] (short) (narrow) %v1405_v13, 32 }
 0x1e5   : > { %1520 = vrot.lane.b32.xlu2 %v1519_v5, %s1655_s17 }
 0x1ea   : > { %1023 = vxpose.xlu0.b32.end [4/4] (short) (narrow) %v1406_v15, 32 }
 0x1ed   : > { %1525 = vrot.lane.b32.xlu2 %v1544_v60, %s1655_s17 }
 0x1f5   : > { %1530 = vrot.lane.b32.xlu2 %v1529_v9, %s1655_s17 }
 0x1fd   : > { %1535 = vrot.lane.b32.xlu2 %v1514_v2, %s1656_s4  ;;  %v1661_v2 = vmov 3  }
 0x205   : > { %1540 = vrot.lane.b32.xlu2 %v1519_v5, %s1656_s4  ;;  %v1662_v5 = vmov 5  }
 0x20d   : > { %1550 = vrot.lane.b32.xlu2 %v1529_v9, %s1656_s4 }
 0x211   : > { %836 = vxpose.xlu1.b32.start [1/4] (short) (narrow) %v1391_v29, 32  ;;  %v255_v29 = vld [vmem:[%s1764_s16 + $0x20] sm:$0x1] }
 0x219   : > { %837 = vxpose.xlu1.b32.cont [2/4] (short) (narrow) %v1392_v27, 32  ;;  %v256_v27 = vld [vmem:[%s1764_s16 + $0x28] sm:$0x1]  ;;  %s1257_s16 = sld [smem:[#allocation2]] }
 0x221   : > { %838 = vxpose.xlu1.b32.cont [3/4] (short) (narrow) %v1393_v11, 32 }
 0x229   : > { %839 = vxpose.xlu1.b32.end [4/4] (short) (narrow) %v1394_v14, 32 }
 0x233   : > { %942 = vxpose.xlu2.b32.start [1/4] (short) (narrow) %v827_v16, 32 }
 0x237   : > { %v1516_v17 = vpop.permute.xlu2 %1515 }
 0x238   : > { %v1518_v19 = vunpack.i.h.bf16 %v1516_v17  ;;  %v1517_v20 = vunpack.i.l.bf16 %v1516_v17 }
 0x23a   : > { %v895_v22 = vsel %vm316_vm0, %v1517_v20, %v1518_v19 }
 0x23b   : > { %925 = vmatpush.msra.mxu2 %v895_v22  ;;  %943 = vxpose.xlu2.b32.cont [2/4] (short) (narrow) %v828_v21, 32 }
 0x23f   : > { %v1521_v23 = vpop.permute.xlu2 %1520 }
 0x240   : > { %v1523_v34 = vunpack.i.h.bf16 %v1521_v23  ;;  %v1522_v35 = vunpack.i.l.bf16 %v1521_v23 }
 0x242   : > { %v894_v38 = vsel %vm316_vm0, %v1522_v35, %v1523_v34 }
 0x243   : > { %926 = vmatpush.msra.mxu2 %v894_v38  ;;  %944 = vxpose.xlu2.b32.cont [3/4] (short) (narrow) %v829_v36, 32 }
 0x247   : > { %v1526_v33 = vpop.permute.xlu2 %1525 }
 0x248   : > { %v1528_v37 = vunpack.i.h.bf16 %v1526_v33  ;;  %v1527_v39 = vunpack.i.l.bf16 %v1526_v33 }
 0x24a   : > { %v893_v41 = vsel %vm316_vm0, %v1527_v39, %v1528_v37 }
 0x24b   : > { %927 = vmatpush.msra.mxu2 %v893_v41  ;;  %945 = vxpose.xlu2.b32.end [4/4] (short) (narrow) %v830_v40, 32 }
 0x24e   : > { %v1546_v53 = vpop.permute.xlu1 %1545 }
 0x24f   : > { %v1531_v43 = vpop.permute.xlu2 %1530  ;;  %v1548_v54 = vunpack.i.h.bf16 %v1546_v53  ;;  %v1547_v32 = vunpack.i.l.bf16 %v1546_v53 }
 0x250   : > { %v1533_v44 = vunpack.i.h.bf16 %v1531_v43  ;;  %v1532_v47 = vunpack.i.l.bf16 %v1531_v43 }
 0x251   : > { %v1069_v30 = vsel %vm539_vm1, %v1547_v32, %v1548_v54  ;;  %1556 = vset.pattern.permute.xlu0 %v1661_v2 }
 0x252   : > { %v892_v48 = vsel %vm316_vm0, %v1532_v47, %v1533_v44 }
 0x253   : > { %928 = vmatpush.msra.mxu2 %v892_v48 }
 0x257   : > { %v1536_v49 = vpop.permute.xlu2 %1535 }
 0x258   : > { %v1538_v51 = vunpack.i.h.bf16 %v1536_v49  ;;  %v1537_v52 = vunpack.i.l.bf16 %v1536_v49  ;;  %1130 = vperm.xlu0 %1556, %v1837_v50  }
 0x25a   : > { %v1071_v26 = vsel %vm539_vm1, %v1537_v52, %v1538_v51 }
 0x25b   : > { %1100 = vmatpush.msra.mxu0 %v1071_v26 }
 0x25f   : > { %v1541_v25 = vpop.permute.xlu2 %1540 }
 0x260   : > { %v1543_v55 = vunpack.i.h.bf16 %v1541_v25  ;;  %v1542_v24 = vunpack.i.l.bf16 %v1541_v25  ;;  %1560 = vset.pattern.permute.xlu0 %v1662_v5 }
 0x261   : > { %1213 = vperm.xlu0 %1560, %v1821_v45  }
 0x262   : > { %v1070_v57 = vsel %vm539_vm1, %v1542_v24, %v1543_v55 }
 0x263   : > { %1101 = vmatpush.msra.mxu0 %v1070_v57 }
 0x265   : > { %1102 = vmatpush.msra.mxu0 %v1069_v30 }
 0x267   : > { %v1551_v58 = vpop.permute.xlu2 %1550 }
 0x268   : > { %v1553_v31 = vunpack.i.h.bf16 %v1551_v58  ;;  %v1552_v59 = vunpack.i.l.bf16 %v1551_v58 }
 0x269   : > { %1564 = vset.pattern.permute.xlu0 %v1664_v4 }
 0x26a   : > { %v1068_v28 = vsel %vm539_vm1, %v1552_v59, %v1553_v31  ;;  %1237 = vperm.xlu0 %1564, %v1837_v50  }
 0x26b   : > { %1103 = vmatpush.msra.mxu0 %v1068_v28 }
 0x276   : > { %v1036_v56 = vpop.trf.xlu0 }
 0x277   : > { %1407 = vmatmul.msk.f32.vlgmr.msra.gmra.mxu0 %vm900_vm11, %v1036_v56 }
 0x27c   : > { %1555 = vset.pattern.permute.xlu1 %v1661_v2 }
 0x27e   : > { %v1037_v0 = vpop.trf.xlu0 }
 0x27f   : > { %1408 = vmatmul.msk.f32.gmra.mxu0 %vm900_vm11, %v1037_v0 }
 0x283   : > { %1126 = vperm.xlu1 %1555, %v1821_v45  }
 0x286   : > { %v1038_v60 = vpop.trf.xlu0 }
 0x287   : > { %1409 = vmatmul.msk.f32.gmra.mxu0 %vm900_vm11, %v1038_v60 }
 0x28b   : > { %1134 = vperm.xlu1 %1555, %v1828_v46  }
 0x28e   : > { %v1039_v62 = vpop.trf.xlu0 }
 0x28f   : > { %1410 = vmatmul.msk.f32.gmra.mxu0 %vm900_vm11, %v1039_v62 }
 0x293   : > { %1558 = vset.pattern.permute.xlu1 %v1663_v6 }
 0x294   : > { %1193 = vperm.xlu1 %1558, %v1821_v45  }
 0x29c   : > { %1201 = vperm.xlu1 %1558, %v1828_v46  }
 0x2a4   : > { %1561 = vset.pattern.permute.xlu1 %v1662_v5 }
 0x2a5   : > { %1217 = vperm.xlu1 %1561, %v1837_v50  }
 0x2ad   : > { %1554 = vset.pattern.permute.xlu2 %v1661_v2  ;;  %1562 = vset.pattern.permute.xlu1 %v1664_v4 }
 0x2ae   : > { %1229 = vperm.xlu1 %1562, %v1813_v42  }
 0x2b4   : > { %1122 = vperm.xlu2 %1554, %v1813_v42  }
 0x2b5   : > { %v852_v63 = vpop.trf.xlu1 }
 0x2b6   : > { %1395 = vmatmul.msk.f32.vlgmr.msra.gmra.mxu2 %vm900_vm11, %v852_v63  ;;  %1241 = vperm.xlu1 %1562, %v1828_v46  }
 0x2bc   : > { %1557 = vset.pattern.permute.xlu2 %v1663_v6 }
 0x2bd   : > { %v853_v61 = vpop.trf.xlu1  ;;  %1189 = vperm.xlu2 %1557, %v1813_v42  }
 0x2be   : > { %1396 = vmatmul.msk.f32.gmra.mxu2 %vm900_vm11, %v853_v61  ;;  %1264 = vrot.lane.b32.xlu1 %v256_v27, %s1656_s4 }
 0x2c5   : > { %v854_v1 = vpop.trf.xlu1  ;;  %1197 = vperm.xlu2 %1557, %v1837_v50  }
 0x2c6   : > { %1397 = vmatmul.msk.f32.gmra.mxu2 %vm900_vm11, %v854_v1 }
 0x2ca   : > { %v1131_v35 = vpop.permute.xlu0 %1130 }
 0x2cc   : > { %v958_v3 = vpop.trf.xlu2 }
 0x2cd   : > { %1399 = vmatmul.msk.f32.vlgmr.msra.gmra.mxu3 %vm900_vm11, %v958_v3  ;;  %v855_v12 = vpop.trf.xlu1  ;;  %1559 = vset.pattern.permute.xlu2 %v1662_v5 }
 0x2ce   : > { %1398 = vmatmul.msk.f32.gmra.mxu2 %vm900_vm11, %v855_v12  ;;  %1209 = vperm.xlu2 %1559, %v1813_v42  }
 0x2d4   : > { %v959_v7 = vpop.trf.xlu2 }
 0x2d5   : > { %1400 = vmatmul.msk.f32.gmra.mxu3 %vm900_vm11, %v959_v7 }
 0x2d6   : > { %1221 = vperm.xlu2 %1559, %v1828_v46  }
 0x2dc   : > { %v960_v8 = vpop.trf.xlu2 }
 0x2dd   : > { %1401 = vmatmul.msk.f32.gmra.mxu3 %vm900_vm11, %v960_v8 }
 0x2de   : > { %1563 = vset.pattern.permute.xlu2 %v1664_v4 }
 0x2df   : > { %1233 = vperm.xlu2 %1563, %v1821_v45  }
 0x2e4   : > { %v961_v9 = vpop.trf.xlu2 }
 0x2e5   : > { %1402 = vmatmul.msk.f32.gmra.mxu3 %vm900_vm11, %v961_v9 }
 0x2e7   : > { %1262 = vrot.lane.b32.xlu2 %v255_v29, %s1656_s4  ;;  %s240_s4 = sand.u32 1, %s1637_s21  }
 0x2e8   : > { %s241_s26 = scalar_lea.vmem [#allocation3], %s240_s4  ;;  %s1271_s8 = scalar_lea.sflag [#allocation4], %s240_s4 }
 0x2e9   : > { %s1282_s28 = sshll.u32 %s241_s26, 4  ;;  %s1283_s28 = int_to_ptr.vmem [resolvable:$true] %s1282_s28 }
 0x2f4   : > { %v1105_v11 = vpop.f32.mrf.mxu0 }
 0x2f5   : > { %v1127_v22 = vpop.permute.xlu1 %1126 }
 0x2fc   : > { %v1108_v14 = vpop.f32.mrf.mxu0 }
 0x2fd   : > { %v1135_v49 = vpop.permute.xlu1 %1134 }
 0x304   : > { %v1111_v42 = vpop.f32.mrf.mxu0 }
 0x306   : > { %v1194_v7 = vpop.permute.xlu1 %1193 }
 0x30c   : > { %v1114_v40 = vpop.f32.mrf.mxu0 }
 0x30e   : > { %v1123_v34 = vpop.permute.xlu2 %1122 }
 0x317   : > { %v1190_v62 = vpop.permute.xlu2 %1189 }
 0x31f   : > { %v1198_v9 = vpop.permute.xlu2 %1197 }
 0x339   : > { %v930_v10 = vpop.f32.mrf.mxu2 }
 0x341   : > { %v933_v50 = vpop.f32.mrf.mxu2 }
 0x349   : > { %v936_v16 = vpop.f32.mrf.mxu2 }
 0x350   : > { %v1003_v13 = vpop.f32.mrf.mxu3 }
 0x351   : > { %v1004_v19 = vadd.f32 %v1003_v13, %v930_v10  ;;  %v939_v38 = vpop.f32.mrf.mxu2  ;;  %v1210_v13 = vpop.permute.xlu2 %1209 }
 0x353   : > { %v1117_v46 = vadd.f32 %v1105_v11, %v1004_v19  ;;  %v1202_v11 = vpop.permute.xlu1 %1201 }
 0x355   : > { %v1137_v33 = vadd.f32 %v1123_v34, %v1117_v46 }
 0x357   : > { %v1141_v44 = vmax.f32 %v1137_v33, 0.0 }
 0x358   : > { %v1006_v15 = vpop.f32.mrf.mxu3 }
 0x359   : > { %v1007_v17 = vadd.f32 %v1006_v15, %v933_v50  ;;  %v1222_v19 = vpop.permute.xlu2 %1221 }
 0x35b   : > { %v1118_v45 = vadd.f32 %v1108_v14, %v1007_v17  ;;  %v1218_v15 = vpop.permute.xlu1 %1217 }
 0x35d   : > { %v1138_v36 = vadd.f32 %v1127_v22, %v1118_v45 }
 0x35f   : > { %v1142_v41 = vmax.f32 %v1138_v36, 0.0 }
 0x360   : > { %v1009_v20 = vpop.f32.mrf.mxu3 }
 0x361   : > { %v1010_v21 = vadd.f32 %v1009_v20, %v936_v16  ;;  %v1145_v51 = vadd.f32 %v1142_v41, %v1141_v44  ;;  %v1214_v20 = vpop.permute.xlu0 %1213 }
 0x363   : > { %v1119_v23 = vadd.f32 %v1111_v42, %v1010_v21  ;;  %v1230_v22 = vpop.permute.xlu1 %1229 }
 0x365   : > { %v1139_v37 = vadd.f32 %v1131_v35, %v1119_v23 }
 0x367   : > { %v1143_v47 = vmax.f32 %v1139_v37, 0.0  ;;  %v1234_v37 = vpop.permute.xlu2 %1233 }
 0x368   : > { %v1012_v39 = vpop.f32.mrf.mxu3 }
 0x369   : > { %v1013_v43 = vadd.f32 %v1012_v39, %v939_v38  ;;  %v1146_v26 = vadd.f32 %v1145_v51, %v1143_v47 }
 0x36b   : > { %v1120_v48 = vadd.f32 %v1114_v40, %v1013_v43  ;;  %v1238_v43 = vpop.permute.xlu0 %1237 }
 0x36d   : > { %v1140_v52 = vadd.f32 %v1135_v49, %v1120_v48 }
 0x36f   : > { %v1144_v53 = vmax.f32 %v1140_v52, 0.0  ;;  %v1242_v52 = vpop.permute.xlu1 %1241 }
 0x371   : > { %v1147_v25 = vadd.f32 %v1146_v26, %v1144_v53 }
 0x373   : > { %v1148_v54 = vrot.slane %v1147_v25, 4 }
 0x375   : > { %v1149_v32 = vadd.f32 %v1148_v54, %v1147_v25 }
 0x377   : > { %v1150_v55 = vrot.slane %v1149_v32, 2 }
 0x379   : > { %v1151_v24 = vadd.f32 %v1150_v55, %v1149_v32 }
 0x37b   : > { %v1152_v57 = vrot.slane %v1151_v24, 1 }
 0x37d   : > { %v1153_v30 = vadd.f32 %v1152_v57, %v1151_v24  ;;  %v1265_v57 = vpop.permute.xlu1 %1264 }
 0x37f   : > { %v1154_v58 = vmul.f32 %v1153_v30, %v1877_v18  ;;  %v1263_v30 = vpop.permute.xlu2 %1262 }
 0x381   : > { %v1156_v31 = vsub.f32 %v1142_v41, %v1154_v58  ;;  %v1157_v59 = vsub.f32 %v1143_v47, %v1154_v58  ;;  %v1155_v28 = vsub.f32 %v1141_v44, %v1154_v58  ;;  %v1158_v56 = vsub.f32 %v1144_v53, %v1154_v58 }
 0x383   : > { %v1159_v63 = vmul.f32 %v1155_v28, %v1155_v28  ;;  %v1160_v0 = vmul.f32 %v1156_v31, %v1156_v31  ;;  %v1161_v61 = vmul.f32 %v1157_v59, %v1157_v59  ;;  %v1162_v1 = vmul.f32 %v1158_v56, %v1158_v56 }
 0x385   : > { %v1163_v60 = vadd.f32 %v1160_v0, %v1159_v63 }
 0x387   : > { %v1164_v2 = vadd.f32 %v1163_v60, %v1161_v61 }
 0x389   : > { %v1165_v3 = vadd.f32 %v1164_v2, %v1162_v1 }
 0x38b   : > { %v1166_v12 = vrot.slane %v1165_v3, 4 }
 0x38d   : > { %v1167_v5 = vadd.f32 %v1166_v12, %v1165_v3 }
 0x38f   : > { %v1168_v6 = vrot.slane %v1167_v5, 2 }
 0x391   : > { %v1169_v4 = vadd.f32 %v1168_v6, %v1167_v5 }
 0x393   : > { %v1170_v8 = vrot.slane %v1169_v4, 1 }
 0x395   : > { %v1171_v29 = vadd.f32 %v1170_v8, %v1169_v4 }
 0x397   : > { %v1172_v27 = vmul.f32 %v1171_v29, %v1877_v18 }
 0x399   : > { %v1173_v10 = vadd.f32 0.0001, %v1172_v27 }
 0x39b   : > { %1573 = vrsqrt.f32 %v1173_v10  ;;  %vm1180_vm13 = vweird.f32 %v1173_v10 }
 0x3a1   : > { %v1574_v50 = vpop.eup %1573 }
 0x3a2   : > { %v1175_v14 = vmul.f32 %v1574_v50, %v1173_v10  ;;  %vm1181_vm12 = vweird.f32 %v1574_v50 }
 0x3a3   : > { %vm1182_vm14 = vmor %vm1180_vm13, %vm1181_vm12 }
 0x3a4   : > { %v1176_v16 = vmul.f32 %v1574_v50, %v1175_v14 }
 0x3a6   : > { %v1177_v17 = vmul.f32 0.5, %v1176_v16 }
 0x3a8   : > { %v1178_v42 = vsub.f32 1.5, %v1177_v17 }
 0x3aa   : > { %v1179_v45 = vmul.f32 %v1574_v50, %v1178_v42 }
 0x3ac   : > { %v1183_v21 = vsel %vm1182_vm14, %v1574_v50, %v1179_v45 }
 0x3ad   : > { %v1184_v46 = vmul.f32 %v1183_v21, %v1155_v28  ;;  %v1185_v18 = vmul.f32 %v1183_v21, %v1156_v31  ;;  %v1186_v23 = vmul.f32 %v1183_v21, %v1157_v59  ;;  %v1187_v34 = vmul.f32 %v1183_v21, %v1158_v56 }
 0x3ae   : > { %v1258_v31 = vstv %s1257_s16  ;;  %v1266_v28 = vsel %vm539_vm1, %v1263_v30, %v1265_v57 }
 0x3af   : > { %v1204_v35 = vmul.f32 %v1190_v62, %v1184_v46  ;;  %v1205_v36 = vmul.f32 %v1194_v7, %v1185_v18  ;;  %v1206_v38 = vmul.f32 %v1198_v9, %v1186_v23  ;;  %v1207_v33 = vmul.f32 %v1202_v11, %v1187_v34 }
 0x3b1   : > { %v1224_v39 = vadd.f32 %v1210_v13, %v1204_v35  ;;  %v1226_v40 = vadd.f32 %v1218_v15, %v1206_v38  ;;  %v1225_v41 = vadd.f32 %v1214_v20, %v1205_v36  ;;  %v1227_v44 = vadd.f32 %v1222_v19, %v1207_v33 }
 0x3b3   : > { %v1244_v47 = vmul.f32 %v1230_v22, %v1224_v39  ;;  %v1245_v48 = vmul.f32 %v1234_v37, %v1225_v41  ;;  %v1246_v49 = vmul.f32 %v1238_v43, %v1226_v40  ;;  %v1247_v26 = vmul.f32 %v1242_v52, %v1227_v44 }
 0x3b5   : > { %v1248_v51 = vadd.f32 %v1245_v48, %v1244_v47 }
 0x3b7   : > { %v1249_v53 = vadd.f32 %v1248_v51, %v1246_v49 }
 0x3b9   : > { %v1250_v25 = vadd.f32 %v1249_v53, %v1247_v26 }
 0x3bb   : > { %v1251_v54 = vrot.slane %v1250_v25, 4 }
 0x3bd   : > { %v1252_v32 = vadd.f32 %v1251_v54, %v1250_v25 }
 0x3bf   : > { %v1253_v55 = vrot.slane %v1252_v32, 2 }
 0x3c1   : > { %v1254_v24 = vadd.f32 %v1253_v55, %v1252_v32 }
 0x3c3   : > { %v1255_v58 = vrot.slane %v1254_v24, 1 }
 0x3c5   : > { %v1256_v59 = vadd.f32 %v1255_v58, %v1254_v24 }
 0x3c7   : > { %v1259_v56 = vadd.f32 %v1258_v31, %v1256_v59 }
 0x3c9   : > { %v1268_v63 = vmul.f32 %v1266_v28, %v1259_v56 }
 0x3cb   : > { %1269 = vst [vmem:[%s241_s26] sm:$0x1] %v1268_v63 }
 0x3cc   : > { %1602 = shalt.err (!%p1599_p5)
}
 0x3cd   : > { %1420 = dma.vmem_to_hbm [thread:$0]  (%p1738_p4), %s1283_s28, 16, %s1285_s30, %s1271_s8  }
 0x3ce PF: > { %p1426_p6 = scmp.ge.s32.totalorder %s1653_s25, 2  ;;  %s1296_s14 = sand.u32 1, %s1633_s20  }
 0x3cf   : > { %s1297_s16 = scalar_lea.sflag [#allocation4], %s1296_s14 }
 0x3d0   : > { %p1423_p7 = pnand %p1426_p6, %p1745_p8 }
 0x3d2   : > { %p1424_p9 = pneg %p1423_p7 }
 0x3d4   : > { %1628 = dma.done.wait (%p1424_p9), %s1297_s16, 16  }
 0x3d5   : > { %1630 = vsyncadd (%p1424_p9), %s1297_s16, 4294967280  ;;  %s19_s25 = sadd.s32 1, %s1653_s25   ;;  %s2075_s20 = smov %s1637_s21 }
 0x3d6   : > { %p16_p10 = scmp.ge.s32.totalorder %s19_s25, 4   ;;  %s2076_s21 = smov %s1641_s22 }
 0x3d7   : > { %s2077_s22 = smov %s1751_s7  ;;  %s2078_s23 = smov %s1649_s24 }
 0x3d8   : > { %s2079_s24 = smov %s2081_s27  ;;  %18 = sbr.rel (!%p16_p10) target bundleno = 6 (0x6), region = 79 }
 0x3dd   :  { %1302 = vsyncpa [#allocation4], 1 }
 0x3de   :  { %1304 = vsyncpa [#allocation4 + $0x1], 1 }

</bundles_post_ra>
